<compile_context>
chip_gen: v7x
topology: tpu7x:2x2x1
jax: 0.10.0
libtpu: 0.0.40
codegen_flags: <defaults>
</compile_context>

<pallas_src>
import math

import jax
import jax.numpy as jnp
from jax import lax
from jax.experimental import pallas as pl
from jax.experimental.pallas import tpu as pltpu


def _simple_sequential_kernel(x_ref, m_ref, w1_ref, b1_ref, w2_ref, b2_ref, o_ref):
    """One (batch, spatial-tile) block.

    x_ref : VMEM (1, C,  tile)   input, channels on sublanes, spatial on lanes
    m_ref : VMEM (1, 1,  chunk)  periodic k-space column mask (chunk % W == 0)
    w1_ref: VMEM (C,  C1, 1)     net1 1x1-conv weight, w1_ref[c] = column (C1, 1)
    b1_ref: VMEM (C1, 1)         net1 bias
    w2_ref: VMEM (C1, C2, 1)     net2 1x1-conv weight, w2_ref[c] = column (C2, 1)
    b2_ref: VMEM (C2, 1)         net2 bias
    o_ref : VMEM (1, C2, tile)   output
    """
    c_in, c1, _ = w1_ref.shape
    _, c2, _ = w2_ref.shape
    chunk = m_ref.shape[2]
    tile = x_ref.shape[2]
    n_sub = tile // chunk

    # Loop-invariant small operands: load once, keep in vregs.
    m = m_ref[0]                                   # (1, chunk)
    b1 = b1_ref[...]                               # (C1, 1)
    b2 = b2_ref[...]                               # (C2, 1)
    w1_cols = [w1_ref[c] for c in range(c_in)]     # each (C1, 1)
    w2_cols = [w2_ref[c] for c in range(c1)]       # each (C2, 1)

    def body(j, carry):
        off = pl.multiple_of(j * chunk, chunk)     # lane-aligned (chunk % 128 == 0)
        xs = x_ref[0, :, pl.ds(off, chunk)]        # (C, chunk)

        # net1: vectorized 1x1 conv over all C1 output channels at once.
        h = w1_cols[0] * xs[0:1, :]
        for c in range(1, c_in):
            h = h + w1_cols[c] * xs[c:c + 1, :]
        h = jnp.maximum(h + b1, 0.0) * m           # ReLU then column mask, (C1, chunk)

        # net2: same structure on net1's output, same mask.
        y = w2_cols[0] * h[0:1, :]
        for c in range(1, c1):
            y = y + w2_cols[c] * h[c:c + 1, :]
        y = jnp.maximum(y + b2, 0.0) * m           # (C2, chunk)

        o_ref[0, :, pl.ds(off, chunk)] = y.astype(o_ref.dtype)
        return carry

    lax.fori_loop(0, n_sub, body, 0, unroll=(n_sub <= 8))


def _plan_tiling(hw, w, batch, c_in, c_out, *, tile_target, chunk_target, min_grid):
    """Pick (chunk, rows_per_tile):
       chunk = multiple of lcm(W, 128)  -> lane-aligned & mask-periodic,
       tile  = chunk * n_sub divides HW -> no wrapper pad/slice in the common case,
       tile near tile_target lanes      -> 0.5-2 MiB x blocks, amortize grid overhead,
       B * n_tiles >= min_grid          -> megacore sharding on v7x,
       double-buffered blocks well under the 64 MiB/TC v7x VMEM ceiling."""
    lane = 128
    base = (w * lane) // math.gcd(w, lane)             # lcm(W, 128)
    padded = (hw % base) != 0
    hw_pad = -(-hw // base) * base
    n_base = hw_pad // base

    chunk_cap = max(base, chunk_target)
    ck = 1
    for k in range(1, n_base + 1):
        if n_base % k == 0 and k * base <= chunk_cap:
            ck = k
    chunk = ck * base
    n_rows = hw_pad // chunk

    lane_budget = (24 * 1024 * 1024) // (8 * max(1, c_in + c_out))   # VMEM guard
    tile_cap = max(chunk, min(tile_target, lane_budget))
    max_rows = max(1, tile_cap // chunk)

    cands = [r for r in range(1, n_rows + 1) if n_rows % r == 0 and r <= max_rows]
    good = [r for r in cands if batch * (n_rows // r) >= min_grid]
    n_sub = max(good) if good else max(cands)
    return chunk, n_sub, hw_pad, padded


def simple_sequential(x_nchw, mask, w1, b1, w2, b2, *,
                      tile_target=131072, chunk_target=1024, min_grid_points=4):
    """out = net2(net1(x, mask), mask), net_i(x, m) = relu(conv1x1_i(x)) * m.

    x_nchw: [B, C, H, W] f32 (NCHW end-to-end, no wrapper transposes)
    mask  : [B, 1, 1, W] f32 k-space column mask
    w1: [C, C1], b1: [1, C1]; w2: [C1, C2], b2: [1, C2]
    """
    B, C, H, W = x_nchw.shape
    C1 = w1.shape[1]
    C2 = w2.shape[1]
    HW = H * W

    chunk, n_sub, HW_pad, padded = _plan_tiling(
        HW, W, B, C, C2, tile_target=tile_target,
        chunk_target=chunk_target, min_grid=min_grid_points)
    tile = chunk * n_sub
    n_tiles = HW_pad // tile

    x_flat = x_nchw.reshape(B, C, HW)                  # contiguous reshape (free)
    if padded:
        # TODO(synk): handle the ragged tail with in-kernel masked stores instead of
        # this extra pad/slice HBM round trip (only taken when H*W % lcm(W,128) != 0).
        x_flat = jnp.pad(x_flat, ((0, 0), (0, 0), (0, HW_pad - HW)))

    # Tiny resident mask: chunk % W == 0, so one periodic chunk-wide row per batch
    # covers every lane-aligned window the kernel touches.
    m_chunk = jnp.tile(mask.reshape(B, 1, W), (1, 1, chunk // W))    # (B, 1, chunk)

    # Weight columns addressable by leading index inside the kernel.
    w1_k = w1[:, :, None]          # (C, C1, 1):  w1_k[c] = (C1, 1)
    w2_k = w2[:, :, None]          # (C1, C2, 1): w2_k[c] = (C2, 1)
    b1_c = b1.reshape(C1, 1)
    b2_c = b2.reshape(C2, 1)

    flops = 2 * B * HW * (C * C1 + C1 * C2)
    bytes_accessed = 4 * (B * HW_pad * (C + C2) + B * chunk
                          + C * C1 + C1 + C1 * C2 + C2)
    block_bytes = 4 * ((C + C2) * tile + chunk)
    vmem_limit = int(min(48 * 1024 * 1024, max(8 * 1024 * 1024, 4 * block_bytes)))

    out = pl.pallas_call(
        _simple_sequential_kernel,
        out_shape=jax.ShapeDtypeStruct((B, C2, HW_pad), x_nchw.dtype),
        grid=(B, n_tiles),
        in_specs=[
            pl.BlockSpec((1, C, tile), lambda b, i: (b, 0, i)),      # x: streamed
            pl.BlockSpec((1, 1, chunk), lambda b, i: (b, 0, 0)),     # mask: resident per batch
            pl.BlockSpec((C, C1, 1), lambda b, i: (0, 0, 0)),        # w1 columns
            pl.BlockSpec((C1, 1), lambda b, i: (0, 0)),              # b1
            pl.BlockSpec((C1, C2, 1), lambda b, i: (0, 0, 0)),       # w2 columns
            pl.BlockSpec((C2, 1), lambda b, i: (0, 0)),              # b2
        ],
        out_specs=pl.BlockSpec((1, C2, tile), lambda b, i: (b, 0, i)),
        compiler_params=pltpu.CompilerParams(
            dimension_semantics=("parallel", "parallel"),
            vmem_limit_bytes=vmem_limit),
        cost_estimate=pl.CostEstimate(
            flops=flops, transcendentals=0, bytes_accessed=bytes_accessed),
    )(x_flat, m_chunk, w1_k, b1_c, w2_k, b2_c)

    if padded:
        out = out[:, :, :HW]
    return out.reshape(B, C2, H, W)


def _reference(x, mask, w1, b1, w2, b2):
    """Pure-JAX reference of net2(net1(x, mask), mask), all in NCHW."""
    h = jnp.einsum("bchw,cd->bdhw", x, w1) + b1.reshape(1, -1, 1, 1)
    h = jnp.maximum(h, 0.0) * mask
    y = jnp.einsum("bdhw,de->behw", h, w2) + b2.reshape(1, -1, 1, 1)
    y = jnp.maximum(y, 0.0) * mask
    return y


if __name__ == "__main__":
    B, C, H, W = 2, 4, 16, 16
    C1, C2 = 4, 4  # net1 / net2 output channels

    key = jax.random.PRNGKey(0)
    k_x, k_m, k_w1, k_b1, k_w2, k_b2 = jax.random.split(key, 6)

    x = jax.random.normal(k_x, (B, C, H, W), dtype=jnp.float32)
    # binary k-space column mask, shape [B, 1, 1, W]
    mask = (jax.random.uniform(k_m, (B, 1, 1, W)) > 0.5).astype(jnp.float32)

    w1 = jax.random.normal(k_w1, (C, C1), dtype=jnp.float32) * 0.1
    b1 = jax.random.normal(k_b1, (1, C1), dtype=jnp.float32) * 0.1
    w2 = jax.random.normal(k_w2, (C1, C2), dtype=jnp.float32) * 0.1
    b2 = jax.random.normal(k_b2, (1, C2), dtype=jnp.float32) * 0.1

    ref = _reference(x, mask, w1, b1, w2, b2)

    # Exercise the three code paths: single big tile, multi-tile grid, and the
    # in-kernel chunk loop.  All must match the reference.
    configs = [
        dict(),                                                      # default plan
        dict(tile_target=128, chunk_target=128),                     # grid = (B, 2)
        dict(tile_target=256, chunk_target=128, min_grid_points=1),  # 2 inner chunks
    ]
    for cfg in configs:
        out = simple_sequential(x, mask, w1, b1, w2, b2, **cfg)
        out = jax.block_until_ready(out)
        assert out.shape == (B, C2, H, W)
        assert jnp.allclose(out, ref, atol=1e-5, rtol=1e-5), cfg

    print("KERNEL_OK")
</pallas_src>

<mosaic_0001>
module attributes {stable_mosaic.version = 11 : i64} {
  func.func @_simple_sequential_kernel(%arg0: i32, %arg1: i32, %arg2: memref<1x4x256xf32, #tpu.memory_space<vmem>>, %arg3: memref<1x1x256xf32, #tpu.memory_space<vmem>>, %arg4: memref<4x4x1xf32, #tpu.memory_space<vmem>>, %arg5: memref<4x1xf32, #tpu.memory_space<vmem>>, %arg6: memref<4x4x1xf32, #tpu.memory_space<vmem>>, %arg7: memref<4x1xf32, #tpu.memory_space<vmem>>, %arg8: memref<1x4x256xf32, #tpu.memory_space<vmem>>) attributes {dimension_semantics = [#tpu.dimension_semantics<parallel>, #tpu.dimension_semantics<parallel>], iteration_bounds = array<i64: 2, 1>, scalar_prefetch = 0 : i64, scratch_operands = 0 : i64, tpu.core_type = #tpu.core_type<tc>, window_params = [{transform_indices = @transform_0, window_bounds = array<i64: 1, 4, 256>}, {transform_indices = @transform_1, window_bounds = array<i64: 1, 1, 256>}, {pipeline_mode = #tpu.pipeline_mode<synchronous>, transform_indices = @transform_2, window_bounds = array<i64: 4, 4, 1>}, {pipeline_mode = #tpu.pipeline_mode<synchronous>, transform_indices = @transform_3, window_bounds = array<i64: 4, 1>}, {pipeline_mode = #tpu.pipeline_mode<synchronous>, transform_indices = @transform_4, window_bounds = array<i64: 4, 4, 1>}, {pipeline_mode = #tpu.pipeline_mode<synchronous>, transform_indices = @transform_5, window_bounds = array<i64: 4, 1>}, {transform_indices = @transform_6, window_bounds = array<i64: 1, 4, 256>}]} {
    %c0 = arith.constant 0 : index
    %c0_0 = arith.constant 0 : index
    %c0_1 = arith.constant 0 : index
    %0 = vector.load %arg3[%c0, %c0_0, %c0_1] : memref<1x1x256xf32, #tpu.memory_space<vmem>>, vector<1x1x256xf32>
    %1 = vector.shape_cast %0 : vector<1x1x256xf32> to vector<1x256xf32>
    %c0_2 = arith.constant 0 : index
    %c0_3 = arith.constant 0 : index
    %2 = vector.load %arg5[%c0_2, %c0_3] : memref<4x1xf32, #tpu.memory_space<vmem>>, vector<4x1xf32>
    %c0_4 = arith.constant 0 : index
    %c0_5 = arith.constant 0 : index
    %3 = vector.load %arg7[%c0_4, %c0_5] : memref<4x1xf32, #tpu.memory_space<vmem>>, vector<4x1xf32>
    %c0_6 = arith.constant 0 : index
    %c0_7 = arith.constant 0 : index
    %c0_8 = arith.constant 0 : index
    %4 = vector.load %arg4[%c0_6, %c0_7, %c0_8] : memref<4x4x1xf32, #tpu.memory_space<vmem>>, vector<1x4x1xf32>
    %5 = vector.shape_cast %4 : vector<1x4x1xf32> to vector<4x1xf32>
    %c1 = arith.constant 1 : index
    %c0_9 = arith.constant 0 : index
    %c0_10 = arith.constant 0 : index
    %6 = vector.load %arg4[%c1, %c0_9, %c0_10] : memref<4x4x1xf32, #tpu.memory_space<vmem>>, vector<1x4x1xf32>
    %7 = vector.shape_cast %6 : vector<1x4x1xf32> to vector<4x1xf32>
    %c2 = arith.constant 2 : index
    %c0_11 = arith.constant 0 : index
    %c0_12 = arith.constant 0 : index
    %8 = vector.load %arg4[%c2, %c0_11, %c0_12] : memref<4x4x1xf32, #tpu.memory_space<vmem>>, vector<1x4x1xf32>
    %9 = vector.shape_cast %8 : vector<1x4x1xf32> to vector<4x1xf32>
    %c3 = arith.constant 3 : index
    %c0_13 = arith.constant 0 : index
    %c0_14 = arith.constant 0 : index
    %10 = vector.load %arg4[%c3, %c0_13, %c0_14] : memref<4x4x1xf32, #tpu.memory_space<vmem>>, vector<1x4x1xf32>
    %11 = vector.shape_cast %10 : vector<1x4x1xf32> to vector<4x1xf32>
    %c0_15 = arith.constant 0 : index
    %c0_16 = arith.constant 0 : index
    %c0_17 = arith.constant 0 : index
    %12 = vector.load %arg6[%c0_15, %c0_16, %c0_17] : memref<4x4x1xf32, #tpu.memory_space<vmem>>, vector<1x4x1xf32>
    %13 = vector.shape_cast %12 : vector<1x4x1xf32> to vector<4x1xf32>
    %c1_18 = arith.constant 1 : index
    %c0_19 = arith.constant 0 : index
    %c0_20 = arith.constant 0 : index
    %14 = vector.load %arg6[%c1_18, %c0_19, %c0_20] : memref<4x4x1xf32, #tpu.memory_space<vmem>>, vector<1x4x1xf32>
    %15 = vector.shape_cast %14 : vector<1x4x1xf32> to vector<4x1xf32>
    %c2_21 = arith.constant 2 : index
    %c0_22 = arith.constant 0 : index
    %c0_23 = arith.constant 0 : index
    %16 = vector.load %arg6[%c2_21, %c0_22, %c0_23] : memref<4x4x1xf32, #tpu.memory_space<vmem>>, vector<1x4x1xf32>
    %17 = vector.shape_cast %16 : vector<1x4x1xf32> to vector<4x1xf32>
    %c3_24 = arith.constant 3 : index
    %c0_25 = arith.constant 0 : index
    %c0_26 = arith.constant 0 : index
    %18 = vector.load %arg6[%c3_24, %c0_25, %c0_26] : memref<4x4x1xf32, #tpu.memory_space<vmem>>, vector<1x4x1xf32>
    %19 = vector.shape_cast %18 : vector<1x4x1xf32> to vector<4x1xf32>
    %c0_i32 = arith.constant 0 : i32
    %c256_i32 = arith.constant 256 : i32
    %20 = arith.muli %c0_i32, %c256_i32 : i32
    %21 = tpu.assume_multiple %20, 256 : i32
    %c0_27 = arith.constant 0 : index
    %c0_28 = arith.constant 0 : index
    %22 = arith.index_cast %21 : i32 to index
    %23 = vector.load %arg2[%c0_27, %c0_28, %22] : memref<1x4x256xf32, #tpu.memory_space<vmem>>, vector<1x4x256xf32>
    %24 = vector.shape_cast %23 : vector<1x4x256xf32> to vector<4x256xf32>
    %25 = vector.extract_strided_slice %24 {offsets = [0, 0], sizes = [1, 256], strides = [1, 1]} : vector<4x256xf32> to vector<1x256xf32>
    %26 = vector.broadcast %5 : vector<4x1xf32> to vector<4x256xf32>
    %27 = vector.broadcast %25 : vector<1x256xf32> to vector<4x256xf32>
    %28 = arith.mulf %26, %27 : vector<4x256xf32>
    %29 = vector.extract_strided_slice %24 {offsets = [1, 0], sizes = [1, 256], strides = [1, 1]} : vector<4x256xf32> to vector<1x256xf32>
    %30 = vector.broadcast %7 : vector<4x1xf32> to vector<4x256xf32>
    %31 = vector.broadcast %29 : vector<1x256xf32> to vector<4x256xf32>
    %32 = arith.mulf %30, %31 : vector<4x256xf32>
    %33 = arith.addf %28, %32 : vector<4x256xf32>
    %34 = vector.extract_strided_slice %24 {offsets = [2, 0], sizes = [1, 256], strides = [1, 1]} : vector<4x256xf32> to vector<1x256xf32>
    %35 = vector.broadcast %9 : vector<4x1xf32> to vector<4x256xf32>
    %36 = vector.broadcast %34 : vector<1x256xf32> to vector<4x256xf32>
    %37 = arith.mulf %35, %36 : vector<4x256xf32>
    %38 = arith.addf %33, %37 : vector<4x256xf32>
    %39 = vector.extract_strided_slice %24 {offsets = [3, 0], sizes = [1, 256], strides = [1, 1]} : vector<4x256xf32> to vector<1x256xf32>
    %40 = vector.broadcast %11 : vector<4x1xf32> to vector<4x256xf32>
    %41 = vector.broadcast %39 : vector<1x256xf32> to vector<4x256xf32>
    %42 = arith.mulf %40, %41 : vector<4x256xf32>
    %43 = arith.addf %38, %42 : vector<4x256xf32>
    %44 = vector.broadcast %2 : vector<4x1xf32> to vector<4x256xf32>
    %45 = arith.addf %43, %44 : vector<4x256xf32>
    %cst = arith.constant 0.000000e+00 : f32
    %46 = vector.broadcast %cst : f32 to vector<4x256xf32>
    %47 = arith.maximumf %45, %46 : vector<4x256xf32>
    %48 = vector.broadcast %1 : vector<1x256xf32> to vector<4x256xf32>
    %49 = arith.mulf %47, %48 : vector<4x256xf32>
    %50 = vector.extract_strided_slice %49 {offsets = [0, 0], sizes = [1, 256], strides = [1, 1]} : vector<4x256xf32> to vector<1x256xf32>
    %51 = vector.broadcast %13 : vector<4x1xf32> to vector<4x256xf32>
    %52 = vector.broadcast %50 : vector<1x256xf32> to vector<4x256xf32>
    %53 = arith.mulf %51, %52 : vector<4x256xf32>
    %54 = vector.extract_strided_slice %49 {offsets = [1, 0], sizes = [1, 256], strides = [1, 1]} : vector<4x256xf32> to vector<1x256xf32>
    %55 = vector.broadcast %15 : vector<4x1xf32> to vector<4x256xf32>
    %56 = vector.broadcast %54 : vector<1x256xf32> to vector<4x256xf32>
    %57 = arith.mulf %55, %56 : vector<4x256xf32>
    %58 = arith.addf %53, %57 : vector<4x256xf32>
    %59 = vector.extract_strided_slice %49 {offsets = [2, 0], sizes = [1, 256], strides = [1, 1]} : vector<4x256xf32> to vector<1x256xf32>
    %60 = vector.broadcast %17 : vector<4x1xf32> to vector<4x256xf32>
    %61 = vector.broadcast %59 : vector<1x256xf32> to vector<4x256xf32>
    %62 = arith.mulf %60, %61 : vector<4x256xf32>
    %63 = arith.addf %58, %62 : vector<4x256xf32>
    %64 = vector.extract_strided_slice %49 {offsets = [3, 0], sizes = [1, 256], strides = [1, 1]} : vector<4x256xf32> to vector<1x256xf32>
    %65 = vector.broadcast %19 : vector<4x1xf32> to vector<4x256xf32>
    %66 = vector.broadcast %64 : vector<1x256xf32> to vector<4x256xf32>
    %67 = arith.mulf %65, %66 : vector<4x256xf32>
    %68 = arith.addf %63, %67 : vector<4x256xf32>
    %69 = vector.broadcast %3 : vector<4x1xf32> to vector<4x256xf32>
    %70 = arith.addf %68, %69 : vector<4x256xf32>
    %cst_29 = arith.constant 0.000000e+00 : f32
    %71 = vector.broadcast %cst_29 : f32 to vector<4x256xf32>
    %72 = arith.maximumf %70, %71 : vector<4x256xf32>
    %73 = vector.broadcast %1 : vector<1x256xf32> to vector<4x256xf32>
    %74 = arith.mulf %72, %73 : vector<4x256xf32>
    %c0_30 = arith.constant 0 : index
    %c0_31 = arith.constant 0 : index
    %75 = arith.index_cast %21 : i32 to index
    %76 = vector.load %arg8[%c0_30, %c0_31, %75] : memref<1x4x256xf32, #tpu.memory_space<vmem>>, vector<1x4x256xf32>
    %77 = vector.shape_cast %76 : vector<1x4x256xf32> to vector<4x256xf32>
    %78 = vector.shape_cast %74 : vector<4x256xf32> to vector<1x4x256xf32>
    tpu.vector_store %arg8[%c0_30, %c0_31, %75], %78 {strides = array<i32>} : memref<1x4x256xf32, #tpu.memory_space<vmem>>, vector<1x4x256xf32>,
    %c1_i32 = arith.constant 1 : i32
    return
  }
  func.func @transform_0(%arg0: i32, %arg1: i32) -> (i32, i32, i32) {
    %c0_i32 = arith.constant 0 : i32
    %c0_i32_0 = arith.constant 0 : i32
    return %arg0, %c0_i32, %arg1 : i32, i32, i32
  }
  func.func @transform_1(%arg0: i32, %arg1: i32) -> (i32, i32, i32) {
    %c0_i32 = arith.constant 0 : i32
    %c0_i32_0 = arith.constant 0 : i32
    %c0_i32_1 = arith.constant 0 : i32
    return %arg0, %c0_i32, %c0_i32_0 : i32, i32, i32
  }
  func.func @transform_2(%arg0: i32, %arg1: i32) -> (i32, i32, i32) {
    %c0_i32 = arith.constant 0 : i32
    %c0_i32_0 = arith.constant 0 : i32
    %c0_i32_1 = arith.constant 0 : i32
    %c0_i32_2 = arith.constant 0 : i32
    return %c0_i32, %c0_i32_0, %c0_i32_1 : i32, i32, i32
  }
  func.func @transform_3(%arg0: i32, %arg1: i32) -> (i32, i32) {
    %c0_i32 = arith.constant 0 : i32
    %c0_i32_0 = arith.constant 0 : i32
    %c0_i32_1 = arith.constant 0 : i32
    return %c0_i32, %c0_i32_0 : i32, i32
  }
  func.func @transform_4(%arg0: i32, %arg1: i32) -> (i32, i32, i32) {
    %c0_i32 = arith.constant 0 : i32
    %c0_i32_0 = arith.constant 0 : i32
    %c0_i32_1 = arith.constant 0 : i32
    %c0_i32_2 = arith.constant 0 : i32
    return %c0_i32, %c0_i32_0, %c0_i32_1 : i32, i32, i32
  }
  func.func @transform_5(%arg0: i32, %arg1: i32) -> (i32, i32) {
    %c0_i32 = arith.constant 0 : i32
    %c0_i32_0 = arith.constant 0 : i32
    %c0_i32_1 = arith.constant 0 : i32
    return %c0_i32, %c0_i32_0 : i32, i32
  }
  func.func @transform_6(%arg0: i32, %arg1: i32) -> (i32, i32, i32) {
    %c0_i32 = arith.constant 0 : i32
    %c0_i32_0 = arith.constant 0 : i32
    return %arg0, %c0_i32, %arg1 : i32, i32, i32
  }
}

</mosaic_0001>

<bundles_post_ra>
// kernel: tpu_custom_call.1
= control target key start
LH: loop header
LB: loop body
LE: loop exit
PB: predicated region body
PF: predicated region fallthrough
CT: control target
= control target key end

     0   :  { %11 = vsyncpa [#allocation3], 0  ;;  %s1008_s0 = inlined_call_operand.vmem [shape: f32[2,4,256], index: 0, kind: input, shape index: {}]   ;;  %s1009_s1 = inlined_call_operand.vmem [shape: f32[2,1,256], index: 1, kind: input, shape index: {}]   ;;  %s1010_s2 = inlined_call_operand.vmem [shape: f32[4,4,1], index: 2, kind: input, shape index: {}]   ;;  %s1011_s3 = inlined_call_operand.vmem [shape: f32[4,1], index: 3, kind: input, shape index: {}]   ;;  %s1012_s4 = inlined_call_operand.vmem [shape: f32[4,4,1], index: 4, kind: input, shape index: {}]   ;;  %s1013_s5 = inlined_call_operand.vmem [shape: f32[4,1], index: 5, kind: input, shape index: {}]   ;;  %s1014_s6 = inlined_call_operand.hbm [shape: f32[2,4,256], index: 6, kind: output, shape index: {}]  }
   0x1   :  { %13 = vsyncpa [#allocation3 + $0x1], 0  ;;  %s829_s21 = smov 0   ;;  %s831_s22 = smov 0  }
   0x2   :  { %s833_s23 = smov 0   ;;  %s835_s24 = smov 0  }
   0x3   :  { %s837_s25 = smov 0   ;;  %s839_s26 = smov 0  }
   0x4 LB: > { %s632_s27 = sadd.s32 4294967295, %s790_s26   ;;  %s633_s28 = sadd.s32 4294967294, %s790_s26   ;;  %s790_s26 = sphi %s839_s26, %s19_s26   ;;  %s786_s25 = sphi %s837_s25, %s1021_s25   ;;  %s782_s24 = sphi %s835_s24, %s1020_s24   ;;  %s778_s23 = sphi %s833_s23, %s1019_s23   ;;  %s774_s22 = sphi %s831_s22, %s1018_s22   ;;  %s770_s21 = sphi %s829_s21, %s1017_s21  }
   0x5   : > { %s31_s29 = sadd.s32 1, %s786_s25  ;;  %s178_s30 = sadd.s32 1, %s778_s23 }
   0x6   : > { %p33_p0 = scmp.ge.s32.totalorder %s31_s29, 2  ;;  %p188_p1 = scmp.ne.s32.totalorder %s778_s23, %s774_s22 }
   0x7   : > { %p189_p2 = scmp.eq.s32.totalorder %s632_s27, 1  ;;  %p194_p3 = scmp.ne.s32.totalorder %s774_s22, %s770_s21 }
   0x8   : > { %s1023_s29 = smov (%p33_p0, %s31_s29), 0  ;;  %p195_p5 = scmp.eq.s32.totalorder %s633_s28, 1 }
   0x9   : > { %p869_p4 = por %p189_p2, %p188_p1  ;;  %s173_s8 = ssub.s32 %s786_s25, %s1023_s29 }
   0xa   : > { %p636_p6 = scmp.ge.s32.totalorder %s790_s26, 1  ;;  %p176_p7 = scmp.eq.s32.totalorder %s173_s8, 0 }
   0xb   : > { %p876_p8 = por %p195_p5, %p194_p3  ;;  %p245_p9 = scmp.lt.s32.totalorder %s790_s26, 3 }
   0xc   : > { %s882_s10 = scalar_select %p176_p7, %s778_s23, %s178_s30  }
   0xd   : > { %p246_p10 = pnand %p636_p6, %p245_p9 }
   0xe   : > { %v642_v0 = vld [vmem:[%s1010_s2 + $0x8] sm:$0xf] (!%p246_p10)  ;;  %v301_v1 = vld [vmem:[%s1010_s2] sm:$0xf] (!%p246_p10)  ;;  %v792_v2 = vmov (!%p246_p10), 0   ;;  %p284_p11 = scmp.lt.s32.totalorder (!%p246_p10), %s782_s24, 1  ;;  %v322_v11 = vlaneseq (!%p246_p10) }
   0xf   : > { %249 = sbr.rel (%p246_p10) target bundleno = 195 (0xc3), region = 44  ;;  %711 = vset.pattern.permute.xlu1 (!%p246_p10), %v792_v2  ;;  %710 = vset.pattern.permute.xlu0 (!%p246_p10), %v792_v2  ;;  %v643_v3 = vld [vmem:[%s1010_s2 + $0xc] sm:$0xf] (!%p246_p10)  ;;  %v641_v4 = vld [vmem:[%s1010_s2 + $0x4] sm:$0xf] (!%p246_p10)  ;;  %s280_s12 = sand.u32 (!%p246_p10), 1, %s774_s22  }
  0x10   : > { %371 = vperm.xlu1 (!%p246_p10), %711, %v642_v0   ;;  %318 = vperm.xlu0 (!%p246_p10), %710, %v301_v1   ;;  %v308_v5 = vld [vmem:[%s1012_s4] sm:$0xf] (!%p246_p10)  ;;  %v645_v7 = vld [vmem:[%s1012_s4 + $0x8] sm:$0xf] (!%p246_p10)  ;;  %v644_v8 = vld [vmem:[%s1012_s4 + $0x4] sm:$0xf] (!%p246_p10) }
  0x11   : > { %v299_v6 = vld [vmem:[%s1011_s3] sm:$0xf] (!%p246_p10)  ;;  %v646_v10 = vld [vmem:[%s1012_s4 + $0xc] sm:$0xf] (!%p246_p10)  ;;  %v323_v12 = vshrl.u32 (!%p246_p10), %v322_v11, 7  ;;  %s637_s13 = sshll.u32 (!%p246_p10), %s280_s12, 3 }
  0x12   : > { %v300_v9 = vld [vmem:[%s1013_s5] sm:$0xf] (!%p246_p10)  ;;  %s653_s14 = sshll.u32 (!%p246_p10), %s782_s24, 7  ;;  %s282_s15 = scalar_lea.vmem (!%p246_p10), [#allocation2], %s637_s13 }
  0x13   : > { %v922_v13 = vsub.s32 (!%p246_p10), 0, %v323_v12  ;;  %v328_v14 = vsub.s32 (!%p246_p10), 4, %v323_v12  ;;  %v924_v15 = vsub.s32 (!%p246_p10), 1, %v323_v12  ;;  %v353_v16 = vsub.s32 (!%p246_p10), 5, %v323_v12  ;;  %s544_s16 = sshll.u32 (!%p246_p10), %s282_s15, 4  ;;  %s961_s19 = scalar_lea.hbm (!%p246_p10), %s1014_s6, %s653_s14  ;;  %s963_s16 = int_to_ptr.vmem [resolvable:$true] %s544_s16 }
  0x14   : > { %398 = vperm.xlu1 (!%p246_p10), %711, %v643_v3   ;;  %344 = vperm.xlu0 (!%p246_p10), %710, %v641_v4   ;;  %v926_v18 = vsub.s32 (!%p246_p10), 2, %v323_v12  ;;  %v380_v19 = vsub.s32 (!%p246_p10), 6, %v323_v12  ;;  %v928_v20 = vsub.s32 (!%p246_p10), 3, %v323_v12  ;;  %v407_v21 = vsub.s32 (!%p246_p10), 7, %v323_v12  ;;  %s528_s20 = scalar_lea.sflag (!%p246_p10), [#allocation3], %s280_s12 }
  0x16   : > { %s916_s17 = scalar_select %p284_p11, %s782_s24, 1 }
  0x17   : > { %s793_s24 = smov [#allocation2]  }
  0x18   : > { %447 = vperm.xlu1 %711, %v308_v5   ;;  %425 = vperm.xlu0 %710, %v299_v6   ;;  %s652_s18 = sshll.u32 %s916_s17, 3  ;;  %s640_s28 = sshll.u32 %s916_s17, 1 }
  0x19   : > { %s291_s27 = scalar_lea.vmem %s1008_s0, %s652_s18  ;;  %s296_s11 = scalar_lea.vmem %s1009_s1, %s640_s28 }
  0x1a   : > { %v315_v17 = vld [vmem:[%s291_s27] sm:$0xff]  ;;  %s712_s27 = scalar_lea.vmem %s963_s16, 128  ;;  %s716_s28 = sshll.u32 %s793_s24, 4  ;;  %s717_s28 = int_to_ptr.vmem [resolvable:$false] %s716_s28 }
  0x1b   : > { %v325_v22 = vrot.slane %v315_v17, %v922_v13  ;;  %v329_v23 = vrot.slane %v315_v17, %v328_v14  ;;  %v350_v24 = vrot.slane %v315_v17, %v924_v15  ;;  %v354_v25 = vrot.slane %v315_v17, %v353_v16  ;;  %v298_v54 = vld [vmem:[%s296_s11] sm:$0x3]  ;;  %p713_p12 = scmp.ne.s32.totalorder %s963_s16, %s712_s27  ;;  %s718_s30 = scalar_lea.vmem %s717_s28, 256 }
  0x1c   : > { %479 = vperm.xlu1 %711, %v645_v7   ;;  %462 = vperm.xlu0 %710, %v644_v8   ;;  %v377_v26 = vrot.slane %v315_v17, %v926_v18  ;;  %v381_v27 = vrot.slane %v315_v17, %v380_v19  ;;  %v404_v30 = vrot.slane %v315_v17, %v928_v20  ;;  %p719_p1 = scmp.lt.s32.totalorder %s963_s16, %s717_s28  ;;  %p720_p2 = scmp.lt.s32.totalorder %s718_s30, %s712_s27 }
  0x1d   : > { %v408_v31 = vrot.slane %v315_v17, %v407_v21  ;;  %v335_v32 = vrot.slane %v325_v22, %v922_v13  ;;  %v339_v33 = vrot.slane %v329_v23, %v922_v13  ;;  %v360_v34 = vrot.slane %v350_v24, %v924_v15  ;;  %p714_p13 = pnand %p713_p12, %p869_p4 }
  0x1e   : > { %v364_v35 = vrot.slane %v354_v25, %v924_v15  ;;  %v387_v36 = vrot.slane %v377_v26, %v926_v18  ;;  %v391_v37 = vrot.slane %v381_v27, %v926_v18  ;;  %v414_v38 = vrot.slane %v404_v30, %v928_v20  ;;  %p721_p3 = por %p720_p2, %p719_p1 }
  0x1f   : > { %v418_v39 = vrot.slane %v408_v31, %v928_v20  ;;  %v436_v60 = vrot.slane %v298_v54, %v922_v13  ;;  %v440_v61 = vrot.slane %v298_v54, %v924_v15  ;;  %p715_p0 = pneg %p714_p13 }
  0x20   : > { %513 = vperm.xlu1 %711, %v300_v9   ;;  %496 = vperm.xlu0 %710, %v646_v10  }
  0x21   : > { %p722_p5 = pnand %p721_p3, %p715_p0 }
  0x8f   : > { %v372_v28 = vpop.permute.xlu1 %371  ;;  %v319_v29 = vpop.permute.xlu0 %318 }
  0x90   : > { %v340_v41 = vmul.f32 %v335_v32, %v319_v29  ;;  %v341_v42 = vmul.f32 %v339_v33, %v319_v29  ;;  %v392_v46 = vmul.f32 %v387_v36, %v372_v28  ;;  %v393_v47 = vmul.f32 %v391_v37, %v372_v28 }
  0x93   : > { %v345_v40 = vpop.permute.xlu0 %344  ;;  %v399_v45 = vpop.permute.xlu1 %398 }
  0x94   : > { %v365_v43 = vmul.f32 %v360_v34, %v345_v40  ;;  %v366_v44 = vmul.f32 %v364_v35, %v345_v40  ;;  %v419_v50 = vmul.f32 %v414_v38, %v399_v45  ;;  %v420_v51 = vmul.f32 %v418_v39, %v399_v45 }
  0x96   : > { %v367_v48 = vadd.f32 %v365_v43, %v340_v41  ;;  %v368_v49 = vadd.f32 %v366_v44, %v341_v42 }
  0x97   : > { %v426_v57 = vpop.permute.xlu0 %425  ;;  %v448_v0 = vpop.permute.xlu1 %447 }
  0x98   : > { %v394_v52 = vadd.f32 %v392_v46, %v367_v48  ;;  %v395_v53 = vadd.f32 %v393_v47, %v368_v49 }
  0x9a   : > { %v421_v55 = vadd.f32 %v419_v50, %v394_v52  ;;  %v422_v56 = vadd.f32 %v420_v51, %v395_v53 }
  0x9b   : > { %v463_v3 = vpop.permute.xlu0 %462  ;;  %v480_v19 = vpop.permute.xlu1 %479 }
  0x9c   : > { %v428_v58 = vadd.f32 %v426_v57, %v421_v55  ;;  %v429_v59 = vadd.f32 %v426_v57, %v422_v56 }
  0x9e   : > { %v430_v62 = vmax.f32 %v428_v58, 0.0  ;;  %v431_v63 = vmax.f32 %v429_v59, 0.0 }
  0x9f   : > { %v514_v29 = vpop.permute.xlu1 %513 }
  0xa0   : > { %v443_v1 = vmul.f32 %v436_v60, %v430_v62  ;;  %v444_v2 = vmul.f32 %v440_v61, %v431_v63 }
  0xa2   : > { %v453_v4 = vrot.slane %v443_v1, %v922_v13  ;;  %v457_v5 = vrot.slane %v444_v2, %v922_v13  ;;  %v485_v6 = vrot.slane %v443_v1, %v926_v18  ;;  %v489_v7 = vrot.slane %v444_v2, %v926_v18  ;;  %v497_v18 = vpop.permute.xlu0 %496 }
  0xa3   : > { %v468_v8 = vrot.slane %v443_v1, %v924_v15  ;;  %v472_v9 = vrot.slane %v444_v2, %v924_v15  ;;  %v502_v16 = vrot.slane %v443_v1, %v928_v20  ;;  %v506_v17 = vrot.slane %v444_v2, %v928_v20 }
  0xa4   : > { %v458_v10 = vmul.f32 %v453_v4, %v448_v0  ;;  %v459_v11 = vmul.f32 %v457_v5, %v448_v0  ;;  %v490_v21 = vmul.f32 %v485_v6, %v480_v19  ;;  %v491_v13 = vmul.f32 %v489_v7, %v480_v19 }
  0xa5   : > { %v473_v12 = vmul.f32 %v468_v8, %v463_v3  ;;  %v474_v14 = vmul.f32 %v472_v9, %v463_v3  ;;  %v507_v26 = vmul.f32 %v502_v16, %v497_v18  ;;  %v508_v15 = vmul.f32 %v506_v17, %v497_v18 }
  0xa7   : > { %v475_v22 = vadd.f32 %v473_v12, %v458_v10  ;;  %v476_v23 = vadd.f32 %v474_v14, %v459_v11 }
  0xa9   : > { %v492_v24 = vadd.f32 %v490_v21, %v475_v22  ;;  %v493_v25 = vadd.f32 %v491_v13, %v476_v23 }
  0xab   : > { %v509_v27 = vadd.f32 %v507_v26, %v492_v24  ;;  %v510_v28 = vadd.f32 %v508_v15, %v493_v25 }
  0xad   : > { %v516_v30 = vadd.f32 %v514_v29, %v509_v27  ;;  %v517_v31 = vadd.f32 %v514_v29, %v510_v28 }
  0xaf   : > { %v518_v20 = vmax.f32 %v516_v30, 0.0  ;;  %v519_v32 = vmax.f32 %v517_v31, 0.0 }
  0xb1   : > { %v520_v33 = vmul.f32 %v518_v20, %v436_v60  ;;  %v521_v34 = vmul.f32 %v519_v32, %v440_v61 }
  0xb3   : > { %v524_v35 = vcombine.low %v520_v33, %v521_v34 }
  0xb5   : > { %526 = vst [vmem:[%s282_s15] sm:$0xff] %v524_v35 }
  0xb6   : > { %725 = shalt.err (!%p722_p5)
}
  0xb7   : > { %s726_s8 = scalar_lea.hbm %s961_s19, 128  ;;  %s730_s13 = scalar_lea.hbm %s1014_s6, 256 }
  0xb8   : > { %p727_p6 = scmp.ne.s32.totalorder %s961_s19, %s726_s8  ;;  %p731_p10 = scmp.lt.u32.totalorder %s961_s19, %s1014_s6 }
  0xb9   : > { %p732_p11 = scmp.lt.u32.totalorder %s730_s13, %s726_s8  ;;  %p734_p13 = scmp.lt.u32.totalorder %s726_s8, %s961_s19 }
  0xba   : > { %p728_p7 = pnand %p727_p6, %p869_p4 }
  0xbb   : > { %p733_p12 = por %p732_p11, %p731_p10 }
  0xbc   : > { %p729_p9 = pneg %p728_p7 }
  0xbd   : > { %p735_p0 = por %p734_p13, %p733_p12 }
  0xbf   : > { %p736_p1 = pnand %p735_p0, %p729_p9 }
  0xc1   : > { %739 = shalt.err (!%p736_p1)
}
  0xc2   : > { %654 = dma.vmem_to_hbm [thread:$0]  (%p869_p4), %s963_s16, 128, %s961_s19, %s528_s20  }
  0xc3 PF: > { %p660_p2 = scmp.ge.s32.totalorder %s790_s26, 2  ;;  %s556_s17 = sand.u32 1, %s770_s21  }
  0xc4   : > { %s557_s18 = scalar_lea.sflag [#allocation3], %s556_s17 }
  0xc5   : > { %p657_p3 = pnand %p660_p2, %p876_p8 }
  0xc7   : > { %765 = dma.done.wait (!%p657_p3), %s557_s18, 128  }
  0xc8   : > { %767 = vsyncadd (!%p657_p3), %s557_s18, 4294967168  ;;  %s19_s26 = sadd.s32 1, %s790_s26   ;;  %s1017_s21 = smov %s774_s22 }
  0xc9   : > { %p16_p5 = scmp.ge.s32.totalorder %s19_s26, 4   ;;  %s1018_s22 = smov %s778_s23 }
  0xca   : > { %s1019_s23 = smov %s882_s10  ;;  %s1020_s24 = smov %s786_s25 }
  0xcb   : > { %s1021_s25 = smov %s1023_s29  ;;  %18 = sbr.rel (!%p16_p5) target bundleno = 4 (0x4), region = 88 }
  0xd2   :  { %562 = vsyncpa [#allocation3], 1 }
  0xd3   :  { %564 = vsyncpa [#allocation3 + $0x1], 1 }

</bundles_post_ra>
